<compile_context>
chip_gen: v7x
topology: tpu7x:2x2x1
jax: 0.10.0
libtpu: 0.0.40
codegen_flags: <defaults>
</compile_context>

<pallas_src>
import jax
import jax.numpy as jnp
from jax.experimental import pallas as pl
from jax.experimental.pallas import tpu as pltpu

HIDDEN = 100                       # fixed by OneInputBasis: nn.Linear(num_sensors, 100)
HPAD = 128                         # hidden padded to a full lane tile (zero-pad, exact)
MAX_BATCH_TILE = 1024              # big tiles amortize the ~0.35us/grid-step overhead
MAX_CHUNK_LANES = 256              # keep each block-diag matmul's N dim <= 256 lanes
VMEM_BUDGET_BYTES = 40 * 1024 * 1024   # working-set cap (v7x: 64 MiB physical VMEM)


def _round_up(x, m):
    return ((x + m - 1) // m) * m


def _choose_nb_chunk(nb, dim1):
    """Largest divisor of nb with chunk lane width <= 256 and (if split) a 128-multiple."""
    if nb * dim1 <= MAX_CHUNK_LANES:
        return nb
    for c in range(nb, 0, -1):
        if nb % c == 0 and c * dim1 <= MAX_CHUNK_LANES and (c * dim1) % 128 == 0:
            return c
    return nb   # no clean split: fall back to one full block-diagonal matmul


def pack_node_params(w1, b1, w2, *, use_bf16=True):
    """Pack per-basis Linear params into fused MXU-friendly operands.

    Call ONCE per parameter set (hoisted out of the per-call forward path).
      w1: (nb, num_sensors, 100)   first Linear weights, (in, out) layout per basis
      b1: (nb, 1, 100)             first Linear bias
      w2: (nb, 100, dim1)          second Linear weights (no bias), (in, out) layout
    """
    nb, ns, hidden = w1.shape
    assert hidden == HIDDEN
    dim1 = w2.shape[-1]
    cdt = jnp.bfloat16 if use_bf16 else jnp.float32

    nb_chunk = _choose_nb_chunk(nb, dim1)
    num_chunks = nb // nb_chunk

    # Zero-pad hidden 100 -> 128 (exact: padded W1 cols / b1 entries are zero and the
    # matching padded W2 rows are zero).
    w1p = jnp.pad(w1, ((0, 0), (0, 0), (0, HPAD - HIDDEN)))
    b1p = jnp.pad(b1, ((0, 0), (0, 0), (0, HPAD - HIDDEN)))
    w2p = jnp.pad(w2, ((0, 0), (0, HPAD - HIDDEN), (0, 0)))

    # First layer: all bases concatenated along the lane dim (basis-major order).
    w1_cat = jnp.transpose(w1p, (1, 0, 2)).reshape(ns, nb * HPAD).astype(cdt)
    b1_cat = b1p.reshape(1, nb * HPAD).astype(jnp.float32)        # bias/tanh stay f32

    # Second layer: per-chunk block-diagonal so the kernel output is already cat-ordered.
    w2c = w2p.reshape(num_chunks, nb_chunk, HPAD, dim1)
    eye = jnp.eye(nb_chunk, dtype=w2p.dtype)
    w2_bd = jnp.einsum("ij,cihd->cihjd", eye, w2c).reshape(
        num_chunks, nb_chunk * HPAD, nb_chunk * dim1).astype(cdt)

    return dict(w1_cat=w1_cat, b1_cat=b1_cat, w2_bd=w2_bd,
                nb=nb, dim1=dim1, nb_chunk=nb_chunk, num_chunks=num_chunks,
                num_sensors=ns, compute_dtype=cdt)


def _node_kernel(v_ref, w1_ref, b1_ref, w2_ref, o_ref):
    # v_ref : (TB, ns)                  compute dtype (bf16 or f32) batch tile
    # w1_ref: (ns, nbc*HPAD)            compute dtype  -- this chunk's first-layer weights
    # b1_ref: (1, nbc*HPAD)             f32            -- this chunk's first-layer bias
    # w2_ref: (1, nbc*HPAD, nbc*dim1)   compute dtype  -- this chunk's block-diag W2
    # o_ref : (TB, nbc*dim1)            f32 output tile (cat-ordered columns)
    pre = jnp.dot(v_ref[...], w1_ref[...], preferred_element_type=jnp.float32)
    h = jnp.tanh(pre + b1_ref[...])                 # f32 bias-add + tanh (VPU/EUP)
    h = h.astype(w2_ref.dtype)                      # feed the MXU its native dtype
    o_ref[...] = jnp.dot(h, w2_ref[0],
                         preferred_element_type=jnp.float32).astype(o_ref.dtype)


def _working_set_bytes(tb, ns, nbc, dim1, c_itemsize, weight_bufs):
    nh, nout = nbc * HPAD, nbc * dim1
    b = 2 * tb * ns * c_itemsize                    # v tile, double buffered
    b += 2 * tb * nout * 4                          # out tile, double buffered (f32)
    b += weight_bufs * (ns * nh * c_itemsize + nh * 4 + nh * nout * c_itemsize)
    b += tb * nh * (4 + c_itemsize)                 # h (f32) + compute-dtype copy
    return b


def node_forward(v, params):
    """Pallas forward of `node`: (batch, num_sensors) -> (batch, nb*dim1), cat(dim=1) order."""
    nb, dim1 = params["nb"], params["dim1"]
    nbc, num_chunks = params["nb_chunk"], params["num_chunks"]
    ns = params["num_sensors"]
    cdt = params["compute_dtype"]
    c_itemsize = jnp.dtype(cdt).itemsize
    nout = nb * dim1

    batch = v.shape[0]
    assert v.shape[1] == ns

    single_buffer_weights = (num_chunks == 1)       # grid-invariant weights -> 1 buffer
    weight_bufs = 1 if single_buffer_weights else 2

    # --- batch tiling: as large as VMEM allows, but >=2 steps when the batch allows it
    # so v7x megacore can shard the "parallel" batch axis.
    padded = _round_up(max(batch, 1), 8)
    if padded <= 16:
        tb = padded
    else:
        tb = min(MAX_BATCH_TILE, _round_up(-(-padded // 2), 8))
    while tb > 8 and _working_set_bytes(tb, ns, nbc, dim1, c_itemsize,
                                        weight_bufs) > VMEM_BUDGET_BYTES:
        tb = _round_up(-(-tb // 2), 8)
    padded = _round_up(padded, tb)

    v_in = v.astype(cdt)
    if padded != batch:
        v_in = jnp.pad(v_in, ((0, padded - batch), (0, 0)))

    ws = _working_set_bytes(tb, ns, nbc, dim1, c_itemsize, weight_bufs)
    vmem_limit = int(min(48 * 1024 * 1024,
                         max(16 * 1024 * 1024, ws + ws // 2 + (4 << 20))))

    # Chunk axis outer: the chunk's weights are invariant across the inner batch axis,
    # so their DMA is issued once per chunk while v/out tiles stream.
    grid = (num_chunks, padded // tb)

    def run(single_weights):
        def wspec(shape, index_map):
            if single_weights:
                try:
                    return pl.BlockSpec(shape, index_map, pipeline_mode=pl.Buffered(1))
                except TypeError:
                    pass
            return pl.BlockSpec(shape, index_map)

        return pl.pallas_call(
            _node_kernel,
            out_shape=jax.ShapeDtypeStruct((padded, nout), jnp.float32),
            grid_spec=pltpu.PrefetchScalarGridSpec(
                num_scalar_prefetch=0,
                grid=grid,
                in_specs=[
                    pl.BlockSpec((tb, ns), lambda c, b: (b, 0)),
                    wspec((ns, nbc * HPAD), lambda c, b: (0, c)),
                    wspec((1, nbc * HPAD), lambda c, b: (0, c)),
                    wspec((1, nbc * HPAD, nbc * dim1), lambda c, b: (c, 0, 0)),
                ],
                out_specs=pl.BlockSpec((tb, nbc * dim1), lambda c, b: (b, c)),
            ),
            compiler_params=pltpu.CompilerParams(
                dimension_semantics=("parallel", "parallel"),
                vmem_limit_bytes=vmem_limit,
            ),
        )(v_in, params["w1_cat"], params["b1_cat"], params["w2_bd"])

    try:
        out = run(single_buffer_weights)
    except Exception:
        if not single_buffer_weights:
            raise
        out = run(False)   # robust fallback to default double-buffered weights

    return out[:batch] if padded != batch else out


def node_reference(v, w1, b1, w2):
    # Pure-JAX reference of the PyTorch module (f32 throughout).
    h = jnp.tanh(jnp.einsum("bs,ksh->kbh", v, w1) + b1)   # (nb, batch, 100)
    o = jnp.einsum("kbh,khd->kbd", h, w2)                 # (nb, batch, dim1)
    return jnp.transpose(o, (1, 0, 2)).reshape(v.shape[0], -1)


if __name__ == "__main__":
    num_sensors = 16
    dim1 = 8
    nb = 4   # dim_output_space_basis

    key = jax.random.PRNGKey(0)
    kv, k1, kb, k2, kv2 = jax.random.split(key, 5)

    # Deterministic synthetic parameters (uniform-ish scale like torch Linear init).
    w1 = jax.random.uniform(k1, (nb, num_sensors, HIDDEN), minval=-1.0, maxval=1.0,
                            dtype=jnp.float32) / jnp.sqrt(num_sensors)
    b1 = jax.random.uniform(kb, (nb, 1, HIDDEN), minval=-1.0, maxval=1.0,
                            dtype=jnp.float32) / jnp.sqrt(num_sensors)
    w2 = jax.random.uniform(k2, (nb, HIDDEN, dim1), minval=-1.0, maxval=1.0,
                            dtype=jnp.float32) / jnp.sqrt(HIDDEN)

    # Packing is done once, outside the forward path (per review).
    packed_f32 = pack_node_params(w1, b1, w2, use_bf16=False)
    packed_bf16 = pack_node_params(w1, b1, w2, use_bf16=True)

    # Small batch, exact f32 path.
    v8 = jax.random.normal(kv, (8, num_sensors), dtype=jnp.float32)
    out = jax.block_until_ready(node_forward(v8, packed_f32))
    ref = node_reference(v8, w1, b1, w2)
    assert out.shape == (8, nb * dim1), out.shape
    assert jnp.allclose(out, ref, atol=1e-4, rtol=1e-4), "f32 mismatch vs reference"

    # Larger batch (exercises batch padding + 2 grid steps) with bf16 MXU operands.
    v40 = jax.random.normal(kv2, (40, num_sensors), dtype=jnp.float32)
    out_bf = jax.block_until_ready(node_forward(v40, packed_bf16))
    ref40 = node_reference(v40, w1, b1, w2)
    assert out_bf.shape == (40, nb * dim1), out_bf.shape
    assert jnp.allclose(out_bf, ref40, atol=3e-2, rtol=3e-2), "bf16 mismatch vs reference"

    print("KERNEL_OK")
</pallas_src>

<mosaic_0001>
module attributes {stable_mosaic.version = 11 : i64} {
  func.func @_node_kernel(%arg0: i32, %arg1: i32, %arg2: memref<8x16xf32, #tpu.memory_space<vmem>>, %arg3: memref<16x512xf32, #tpu.memory_space<vmem>>, %arg4: memref<1x512xf32, #tpu.memory_space<vmem>>, %arg5: memref<1x512x32xf32, #tpu.memory_space<vmem>>, %arg6: memref<8x32xf32, #tpu.memory_space<vmem>>) attributes {dimension_semantics = [#tpu.dimension_semantics<parallel>, #tpu.dimension_semantics<parallel>], iteration_bounds = array<i64: 1, 1>, scalar_prefetch = 0 : i64, scratch_operands = 0 : i64, tpu.core_type = #tpu.core_type<tc>, window_params = [{transform_indices = @transform_0, window_bounds = array<i64: 8, 16>}, {pipeline_mode = #tpu.pipeline_mode<synchronous>, transform_indices = @transform_1, window_bounds = array<i64: 16, 512>}, {pipeline_mode = #tpu.pipeline_mode<synchronous>, transform_indices = @transform_2, window_bounds = array<i64: 1, 512>}, {pipeline_mode = #tpu.pipeline_mode<synchronous>, transform_indices = @transform_3, window_bounds = array<i64: 1, 512, 32>}, {transform_indices = @transform_4, window_bounds = array<i64: 8, 32>}]} {
    %c0 = arith.constant 0 : index
    %c0_0 = arith.constant 0 : index
    %0 = vector.load %arg2[%c0, %c0_0] : memref<8x16xf32, #tpu.memory_space<vmem>>, vector<8x16xf32>
    %c0_1 = arith.constant 0 : index
    %c0_2 = arith.constant 0 : index
    %1 = vector.load %arg3[%c0_1, %c0_2] : memref<16x512xf32, #tpu.memory_space<vmem>>, vector<16x512xf32>
    %cst = arith.constant dense<0.000000e+00> : vector<8x512xf32>
    %2 = tpu.matmul %0, %1, %cst {dimension_numbers = #tpu.dot_dimension_numbers<[1], [0], [0], [1], [0, 0, 1, 1], [], []>} : vector<8x16xf32>, vector<16x512xf32>, vector<8x512xf32> -> vector<8x512xf32>
    %c0_3 = arith.constant 0 : index
    %c0_4 = arith.constant 0 : index
    %3 = vector.load %arg4[%c0_3, %c0_4] : memref<1x512xf32, #tpu.memory_space<vmem>>, vector<1x512xf32>
    %4 = vector.broadcast %3 : vector<1x512xf32> to vector<8x512xf32>
    %5 = arith.addf %2, %4 : vector<8x512xf32>
    %6 = math.tanh %5 : vector<8x512xf32>
    %c0_5 = arith.constant 0 : index
    %c0_6 = arith.constant 0 : index
    %c0_7 = arith.constant 0 : index
    %7 = vector.load %arg5[%c0_5, %c0_6, %c0_7] : memref<1x512x32xf32, #tpu.memory_space<vmem>>, vector<1x512x32xf32>
    %8 = vector.shape_cast %7 : vector<1x512x32xf32> to vector<512x32xf32>
    %cst_8 = arith.constant dense<0.000000e+00> : vector<8x32xf32>
    %9 = tpu.matmul %6, %8, %cst_8 {dimension_numbers = #tpu.dot_dimension_numbers<[1], [0], [0], [1], [0, 0, 1, 1], [], []>} : vector<8x512xf32>, vector<512x32xf32>, vector<8x32xf32> -> vector<8x32xf32>
    %c0_9 = arith.constant 0 : index
    %c0_10 = arith.constant 0 : index
    %10 = vector.load %arg6[%c0_9, %c0_10] : memref<8x32xf32, #tpu.memory_space<vmem>>, vector<8x32xf32>
    tpu.vector_store %arg6[%c0_9, %c0_10], %9 {strides = array<i32>} : memref<8x32xf32, #tpu.memory_space<vmem>>, vector<8x32xf32>,
    return
  }
  func.func @transform_0(%arg0: i32, %arg1: i32) -> (i32, i32) {
    %c0_i32 = arith.constant 0 : i32
    %c0_i32_0 = arith.constant 0 : i32
    return %arg1, %c0_i32 : i32, i32
  }
  func.func @transform_1(%arg0: i32, %arg1: i32) -> (i32, i32) {
    %c0_i32 = arith.constant 0 : i32
    %c0_i32_0 = arith.constant 0 : i32
    return %c0_i32, %arg0 : i32, i32
  }
  func.func @transform_2(%arg0: i32, %arg1: i32) -> (i32, i32) {
    %c0_i32 = arith.constant 0 : i32
    %c0_i32_0 = arith.constant 0 : i32
    return %c0_i32, %arg0 : i32, i32
  }
  func.func @transform_3(%arg0: i32, %arg1: i32) -> (i32, i32, i32) {
    %c0_i32 = arith.constant 0 : i32
    %c0_i32_0 = arith.constant 0 : i32
    %c0_i32_1 = arith.constant 0 : i32
    return %arg0, %c0_i32, %c0_i32_0 : i32, i32, i32
  }
  func.func @transform_4(%arg0: i32, %arg1: i32) -> (i32, i32) {
    %c0_i32 = arith.constant 0 : i32
    return %arg1, %arg0 : i32, i32
  }
}

module attributes {stable_mosaic.version = 11 : i64} {
  func.func @_node_kernel(%arg0: i32, %arg1: i32, %arg2: memref<8x16xf32, #tpu.memory_space<vmem>>, %arg3: memref<16x512xf32, #tpu.memory_space<vmem>>, %arg4: memref<1x512xf32, #tpu.memory_space<vmem>>, %arg5: memref<1x512x32xf32, #tpu.memory_space<vmem>>, %arg6: memref<8x32xf32, #tpu.memory_space<vmem>>) attributes {dimension_semantics = [#tpu.dimension_semantics<parallel>, #tpu.dimension_semantics<parallel>], iteration_bounds = array<i64: 1, 1>, scalar_prefetch = 0 : i64, scratch_operands = 0 : i64, tpu.core_type = #tpu.core_type<tc>, window_params = [{transform_indices = @transform_0, window_bounds = array<i64: 8, 16>}, {transform_indices = @transform_1, window_bounds = array<i64: 16, 512>}, {transform_indices = @transform_2, window_bounds = array<i64: 1, 512>}, {transform_indices = @transform_3, window_bounds = array<i64: 1, 512, 32>}, {transform_indices = @transform_4, window_bounds = array<i64: 8, 32>}]} {
    %c0 = arith.constant 0 : index
    %c0_0 = arith.constant 0 : index
    %0 = vector.load %arg2[%c0, %c0_0] : memref<8x16xf32, #tpu.memory_space<vmem>>, vector<8x16xf32>
    %c0_1 = arith.constant 0 : index
    %c0_2 = arith.constant 0 : index
    %1 = vector.load %arg3[%c0_1, %c0_2] : memref<16x512xf32, #tpu.memory_space<vmem>>, vector<16x512xf32>
    %cst = arith.constant dense<0.000000e+00> : vector<8x512xf32>
    %2 = tpu.matmul %0, %1, %cst {dimension_numbers = #tpu.dot_dimension_numbers<[1], [0], [0], [1], [0, 0, 1, 1], [], []>} : vector<8x16xf32>, vector<16x512xf32>, vector<8x512xf32> -> vector<8x512xf32>
    %c0_3 = arith.constant 0 : index
    %c0_4 = arith.constant 0 : index
    %3 = vector.load %arg4[%c0_3, %c0_4] : memref<1x512xf32, #tpu.memory_space<vmem>>, vector<1x512xf32>
    %4 = vector.broadcast %3 : vector<1x512xf32> to vector<8x512xf32>
    %5 = arith.addf %2, %4 : vector<8x512xf32>
    %6 = math.tanh %5 : vector<8x512xf32>
    %c0_5 = arith.constant 0 : index
    %c0_6 = arith.constant 0 : index
    %c0_7 = arith.constant 0 : index
    %7 = vector.load %arg5[%c0_5, %c0_6, %c0_7] : memref<1x512x32xf32, #tpu.memory_space<vmem>>, vector<1x512x32xf32>
    %8 = vector.shape_cast %7 : vector<1x512x32xf32> to vector<512x32xf32>
    %cst_8 = arith.constant dense<0.000000e+00> : vector<8x32xf32>
    %9 = tpu.matmul %6, %8, %cst_8 {dimension_numbers = #tpu.dot_dimension_numbers<[1], [0], [0], [1], [0, 0, 1, 1], [], []>} : vector<8x512xf32>, vector<512x32xf32>, vector<8x32xf32> -> vector<8x32xf32>
    %c0_9 = arith.constant 0 : index
    %c0_10 = arith.constant 0 : index
    %10 = vector.load %arg6[%c0_9, %c0_10] : memref<8x32xf32, #tpu.memory_space<vmem>>, vector<8x32xf32>
    tpu.vector_store %arg6[%c0_9, %c0_10], %9 {strides = array<i32>} : memref<8x32xf32, #tpu.memory_space<vmem>>, vector<8x32xf32>,
    return
  }
  func.func @transform_0(%arg0: i32, %arg1: i32) -> (i32, i32) {
    %c0_i32 = arith.constant 0 : i32
    %c0_i32_0 = arith.constant 0 : i32
    return %arg1, %c0_i32 : i32, i32
  }
  func.func @transform_1(%arg0: i32, %arg1: i32) -> (i32, i32) {
    %c0_i32 = arith.constant 0 : i32
    %c0_i32_0 = arith.constant 0 : i32
    return %c0_i32, %arg0 : i32, i32
  }
  func.func @transform_2(%arg0: i32, %arg1: i32) -> (i32, i32) {
    %c0_i32 = arith.constant 0 : i32
    %c0_i32_0 = arith.constant 0 : i32
    return %c0_i32, %arg0 : i32, i32
  }
  func.func @transform_3(%arg0: i32, %arg1: i32) -> (i32, i32, i32) {
    %c0_i32 = arith.constant 0 : i32
    %c0_i32_0 = arith.constant 0 : i32
    %c0_i32_1 = arith.constant 0 : i32
    return %arg0, %c0_i32, %c0_i32_0 : i32, i32, i32
  }
  func.func @transform_4(%arg0: i32, %arg1: i32) -> (i32, i32) {
    %c0_i32 = arith.constant 0 : i32
    return %arg1, %arg0 : i32, i32
  }
}

</mosaic_0001>

<bundles_post_ra>
// kernel: tpu_custom_call.1
= control target key start
LH: loop header
LB: loop body
LE: loop exit
PB: predicated region body
PF: predicated region fallthrough
CT: control target
= control target key end

     0   :  { %v597_v7 = vmov 0.0   ;;  %vm49_vm0 = vcmask 130048   ;;  %s860_s0 = inlined_call_operand.vmem [shape: f32[8,16], index: 0, kind: input, shape index: {}]   ;;  %s861_s1 = inlined_call_operand.vmem [shape: f32[16,512], index: 1, kind: input, shape index: {}]   ;;  %s862_s2 = inlined_call_operand.vmem [shape: f32[1,512], index: 2, kind: input, shape index: {}]   ;;  %s863_s3 = inlined_call_operand.vmem [shape: f32[1,512,32], index: 3, kind: input, shape index: {}]   ;;  %s864_s4 = inlined_call_operand.hbm [shape: f32[8,32], index: 4, kind: output, shape index: {}]  }
   0x1   :  { %v20_v0 = vld [vmem:[%s861_s1 + $0x8] sm:$0xff]  ;;  %v22_v2 = vld [vmem:[%s861_s1 + $0x18] sm:$0xff]  ;;  %v19_v5 = vld [vmem:[%s861_s1] sm:$0xff]  ;;  %117 = vmatprep.mubr.f32.mxu0 %v597_v7  ;;  %188 = vmatprep.mubr.f32.mxu1 %v597_v7 }
   0x2   :  { %v24_v1 = vld [vmem:[%s861_s1 + $0x28] sm:$0xff]  ;;  %v26_v4 = vld [vmem:[%s861_s1 + $0x38] sm:$0xff]  ;;  %v23_v6 = vld [vmem:[%s861_s1 + $0x20] sm:$0xff] }
   0x3   :  { %v491_v3 = vpack.c.bf16 %v24_v1, %v20_v0  ;;  %v495_v8 = vpack.c.bf16 %v26_v4, %v22_v2  ;;  %v493_v9 = vpack.c.bf16 %v23_v6, %v19_v5  ;;  %v21_v10 = vld [vmem:[%s861_s1 + $0x10] sm:$0xff]  ;;  %v18_v12 = vld [vmem:[%s860_s0] sm:$0xff]  ;;  %v216_v15 = vld [vmem:[%s863_s3 + $0x88] sm:$0xff] }
   0x4   :  { %v25_v11 = vld [vmem:[%s861_s1 + $0x30] sm:$0xff]  ;;  %v215_v14 = vld [vmem:[%s863_s3 + $0x80] sm:$0xff]  ;;  %v248_v18 = vld [vmem:[%s863_s3 + $0x188] sm:$0xff] }
   0x5   :  { %492 = vmatprep.subr.bf16.mxu0 %v491_v3  ;;  %v497_v13 = vpack.c.bf16 %v25_v11, %v21_v10  ;;  %v247_v16 = vld [vmem:[%s863_s3 + $0x180] sm:$0xff]  ;;  %496 = vmatprep.subr.bf16.mxu1 %v495_v8  ;;  %v499_v17 = vpack.c.bf16 %v216_v15, %v215_v14  ;;  %v200_v20 = vld [vmem:[%s863_s3 + $0x8] sm:$0xff]  ;;  %v217_v25 = vld [vmem:[%s863_s3 + $0x90] sm:$0xff] }
   0x6   :  { %494 = vmatpush1.bf16.msra.mxu0 %v493_v9  ;;  %v199_v19 = vld [vmem:[%s863_s3] sm:$0xff]  ;;  %v531_v21 = vpack.c.bf16 %v248_v18, %v247_v16  ;;  %v232_v24 = vld [vmem:[%s863_s3 + $0x108] sm:$0xff]  ;;  %v218_v27 = vld [vmem:[%s863_s3 + $0x98] sm:$0xff] }
   0x7   :  { %498 = vmatpush1.bf16.msra.mxu1 %v497_v13  ;;  %v501_v22 = vpack.c.bf16 %v200_v20, %v199_v19  ;;  %v231_v23 = vld [vmem:[%s863_s3 + $0x100] sm:$0xff]  ;;  %500 = vmatprep.subr.bf16.mxu0 %v499_v17  ;;  %v249_v28 = vld [vmem:[%s863_s3 + $0x190] sm:$0xff]  ;;  %v250_v29 = vld [vmem:[%s863_s3 + $0x198] sm:$0xff]  ;;  %v503_v30 = vpack.c.bf16 %v218_v27, %v217_v25 }
   0x8   :  { %v533_v26 = vpack.c.bf16 %v232_v24, %v231_v23  ;;  %532 = vmatprep.subr.bf16.mxu1 %v531_v21  ;;  %v535_v31 = vpack.c.bf16 %v250_v29, %v249_v28  ;;  %v201_v32 = vld [vmem:[%s863_s3 + $0x10] sm:$0xff]  ;;  %v202_v33 = vld [vmem:[%s863_s3 + $0x18] sm:$0xff]  ;;  %v219_v37 = vld [vmem:[%s863_s3 + $0xa0] sm:$0xff] }
   0x9   :  { %419 = vmatmul.mubr.msk.f32.vlgmr.msra.gmra.mrb[0].mxu0 %vm49_vm0, %v18_v12  ;;  %v233_v34 = vld [vmem:[%s863_s3 + $0x110] sm:$0xff]  ;;  %v505_v35 = vpack.c.bf16 %v202_v33, %v201_v32  ;;  %v234_v36 = vld [vmem:[%s863_s3 + $0x118] sm:$0xff]  ;;  %v220_v38 = vld [vmem:[%s863_s3 + $0xa8] sm:$0xff] }
   0xa   :  { %420 = vmatmul.mubr.msk.f32.vlgmr.msra.gmra.mrb[0].mxu1 %vm49_vm0, %v18_v12  ;;  %502 = vmatpush3.bf16.msra.mxu0 %v501_v22  ;;  %v537_v39 = vpack.c.bf16 %v234_v36, %v233_v34  ;;  %v507_v40 = vpack.c.bf16 %v220_v38, %v219_v37  ;;  %v251_v41 = vld [vmem:[%s863_s3 + $0x1a0] sm:$0xff]  ;;  %v252_v42 = vld [vmem:[%s863_s3 + $0x1a8] sm:$0xff]  ;;  %v221_v48 = vld [vmem:[%s863_s3 + $0xb0] sm:$0xff] }
   0xb   :  { %534 = vmatpush3.bf16.msra.mxu1 %v533_v26  ;;  %504 = vmatprep.subr.bf16.mxu0 %v503_v30  ;;  %v203_v43 = vld [vmem:[%s863_s3 + $0x20] sm:$0xff]  ;;  %v539_v44 = vpack.c.bf16 %v252_v42, %v251_v41  ;;  %v204_v45 = vld [vmem:[%s863_s3 + $0x28] sm:$0xff]  ;;  %v222_v49 = vld [vmem:[%s863_s3 + $0xb8] sm:$0xff] }
   0xc   :  { %536 = vmatprep.subr.bf16.mxu1 %v535_v31  ;;  %v235_v46 = vld [vmem:[%s863_s3 + $0x120] sm:$0xff]  ;;  %v236_v47 = vld [vmem:[%s863_s3 + $0x128] sm:$0xff]  ;;  %v253_v50 = vld [vmem:[%s863_s3 + $0x1b0] sm:$0xff]  ;;  %v509_v51 = vpack.c.bf16 %v204_v45, %v203_v43  ;;  %v511_v54 = vpack.c.bf16 %v222_v49, %v221_v48 }
   0xd   :  { %v254_v52 = vld [vmem:[%s863_s3 + $0x1b8] sm:$0xff]  ;;  %v541_v53 = vpack.c.bf16 %v236_v47, %v235_v46  ;;  %v205_v55 = vld [vmem:[%s863_s3 + $0x30] sm:$0xff] }
   0xe   :  { %506 = vmatpush3.bf16.msra.mxu0 %v505_v35  ;;  %v206_v56 = vld [vmem:[%s863_s3 + $0x38] sm:$0xff]  ;;  %v543_v57 = vpack.c.bf16 %v254_v52, %v253_v50  ;;  %v237_v58 = vld [vmem:[%s863_s3 + $0x130] sm:$0xff] }
   0xf   :  { %538 = vmatpush3.bf16.msra.mxu1 %v537_v39  ;;  %508 = vmatprep.subr.bf16.mxu0 %v507_v40  ;;  %v238_v59 = vld [vmem:[%s863_s3 + $0x138] sm:$0xff] }
  0x10   :  { %540 = vmatprep.subr.bf16.mxu1 %v539_v44 }
  0x11   :  { %9 = vsyncpa [#allocation3], 0  ;;  %v513_v60 = vpack.c.bf16 %v206_v56, %v205_v55  ;;  %v545_v61 = vpack.c.bf16 %v238_v59, %v237_v58  ;;  %v223_v62 = vld [vmem:[%s863_s3 + $0xc0] sm:$0xff]  ;;  %v224_v63 = vld [vmem:[%s863_s3 + $0xc8] sm:$0xff]  ;;  %v29_v46 = vlaneseq  ;;  %vm403_vm1 = vcmask 261120  }
  0x12   :  { %510 = vmatpush3.bf16.msra.mxu0 %v509_v51  ;;  %v255_v0 = vld [vmem:[%s863_s3 + $0x1c0] sm:$0xff]  ;;  %v515_v1 = vpack.c.bf16 %v224_v63, %v223_v62  ;;  %v256_v2 = vld [vmem:[%s863_s3 + $0x1c8] sm:$0xff]  ;;  %v225_v10 = vld [vmem:[%s863_s3 + $0xd0] sm:$0xff] }
  0x13   :  { %542 = vmatpush3.bf16.msra.mxu1 %v541_v53  ;;  %512 = vmatprep.subr.bf16.mxu0 %v511_v54  ;;  %v547_v3 = vpack.c.bf16 %v256_v2, %v255_v0  ;;  %v207_v4 = vld [vmem:[%s863_s3 + $0x40] sm:$0xff]  ;;  %v208_v5 = vld [vmem:[%s863_s3 + $0x48] sm:$0xff]  ;;  %v226_v11 = vld [vmem:[%s863_s3 + $0xd8] sm:$0xff]  ;;  %v30_v47 = vshrl.u32 %v29_v46, 7 }
  0x14   :  { %544 = vmatprep.subr.bf16.mxu1 %v543_v57  ;;  %v239_v6 = vld [vmem:[%s863_s3 + $0x140] sm:$0xff]  ;;  %v517_v7 = vpack.c.bf16 %v208_v5, %v207_v4  ;;  %v240_v8 = vld [vmem:[%s863_s3 + $0x148] sm:$0xff]  ;;  %v257_v12 = vld [vmem:[%s863_s3 + $0x1d0] sm:$0xff]  ;;  %v519_v13 = vpack.c.bf16 %v226_v11, %v225_v10 }
  0x15   :  { %v549_v9 = vpack.c.bf16 %v240_v8, %v239_v6  ;;  %v258_v14 = vld [vmem:[%s863_s3 + $0x1d8] sm:$0xff]  ;;  %v209_v15 = vld [vmem:[%s863_s3 + $0x50] sm:$0xff]  ;;  %v227_v22 = vld [vmem:[%s863_s3 + $0xe0] sm:$0xff]  ;;  %v31_v48 = vsub.s32 0, %v30_v47  ;;  %v35_v50 = vsub.s32 1, %v30_v47  ;;  %v39_v51 = vsub.s32 2, %v30_v47 }
  0x16   :  { %514 = vmatpush3.bf16.msra.mxu0 %v513_v60  ;;  %v210_v16 = vld [vmem:[%s863_s3 + $0x58] sm:$0xff]  ;;  %v551_v17 = vpack.c.bf16 %v258_v14, %v257_v12  ;;  %v241_v19 = vld [vmem:[%s863_s3 + $0x150] sm:$0xff]  ;;  %v228_v23 = vld [vmem:[%s863_s3 + $0xe8] sm:$0xff]  ;;  %v43_v52 = vsub.s32 3, %v30_v47 }
  0x17   :  { %546 = vmatpush3.bf16.msra.mxu1 %v545_v61  ;;  %516 = vmatprep.subr.bf16.mxu0 %v515_v1  ;;  %v521_v18 = vpack.c.bf16 %v210_v16, %v209_v15  ;;  %v242_v20 = vld [vmem:[%s863_s3 + $0x158] sm:$0xff]  ;;  %v259_v24 = vld [vmem:[%s863_s3 + $0x1e0] sm:$0xff]  ;;  %v523_v25 = vpack.c.bf16 %v228_v23, %v227_v22  ;;  %v260_v26 = vld [vmem:[%s863_s3 + $0x1e8] sm:$0xff] }
  0x18   :  { %548 = vmatprep.subr.bf16.mxu1 %v547_v3  ;;  %v553_v21 = vpack.c.bf16 %v242_v20, %v241_v19  ;;  %v211_v27 = vld [vmem:[%s863_s3 + $0x60] sm:$0xff]  ;;  %v212_v28 = vld [vmem:[%s863_s3 + $0x68] sm:$0xff]  ;;  %v555_v29 = vpack.c.bf16 %v260_v26, %v259_v24  ;;  %v229_v33 = vld [vmem:[%s863_s3 + $0xf0] sm:$0xff] }
  0x19   :  { %v525_v30 = vpack.c.bf16 %v212_v28, %v211_v27  ;;  %v243_v31 = vld [vmem:[%s863_s3 + $0x160] sm:$0xff]  ;;  %v244_v32 = vld [vmem:[%s863_s3 + $0x168] sm:$0xff]  ;;  %v230_v35 = vld [vmem:[%s863_s3 + $0xf8] sm:$0xff] }
  0x1a   :  { %518 = vmatpush3.bf16.msra.mxu0 %v517_v7  ;;  %v557_v34 = vpack.c.bf16 %v244_v32, %v243_v31  ;;  %v261_v36 = vld [vmem:[%s863_s3 + $0x1f0] sm:$0xff]  ;;  %v262_v37 = vld [vmem:[%s863_s3 + $0x1f8] sm:$0xff]  ;;  %v527_v38 = vpack.c.bf16 %v230_v35, %v229_v33  ;;  %v27_v49 = vld [vmem:[%s862_s2] sm:$0xf]  ;;  %s598_s2 = smov [#allocation2]  }
  0x1b   :  { %550 = vmatpush3.bf16.msra.mxu1 %v549_v9  ;;  %520 = vmatprep.subr.bf16.mxu0 %v519_v13  ;;  %v559_v39 = vpack.c.bf16 %v262_v37, %v261_v36  ;;  %v213_v40 = vld [vmem:[%s863_s3 + $0x70] sm:$0xff]  ;;  %v214_v41 = vld [vmem:[%s863_s3 + $0x78] sm:$0xff]  ;;  %v32_v53 = vrot.slane %v27_v49, %v31_v48  ;;  %v36_v54 = vrot.slane %v27_v49, %v35_v50 }
  0x1c   :  { %552 = vmatprep.subr.bf16.mxu1 %v551_v17  ;;  %v245_v42 = vld [vmem:[%s863_s3 + $0x170] sm:$0xff]  ;;  %v529_v43 = vpack.c.bf16 %v214_v41, %v213_v40  ;;  %v246_v44 = vld [vmem:[%s863_s3 + $0x178] sm:$0xff]  ;;  %v40_v55 = vrot.slane %v27_v49, %v39_v51  ;;  %v44_v56 = vrot.slane %v27_v49, %v43_v52  ;;  %s411_s3 = sshll.u32 %s598_s2, 4  ;;  %s412_s3 = int_to_ptr.vmem [resolvable:$true] %s411_s3 }
  0x1d   :  { %v561_v45 = vpack.c.bf16 %v246_v44, %v245_v42  ;;  %s573_s23 = scalar_lea.vmem %s412_s3, 128  ;;  %p578_p1 = scmp.lt.s32.totalorder %s412_s3, %s412_s3 }
  0x1e   :  { %522 = vmatpush3.bf16.msra.mxu0 %v521_v18  ;;  %p574_p0 = scmp.ne.s32.totalorder %s412_s3, %s573_s23  ;;  %p579_p2 = scmp.lt.s32.totalorder %s573_s23, %s573_s23 }
  0x1f   :  { %554 = vmatpush3.bf16.msra.mxu1 %v553_v21  ;;  %524 = vmatprep.subr.bf16.mxu0 %v523_v25 }
  0x20   :  { %556 = vmatprep.subr.bf16.mxu1 %v555_v29  ;;  %p580_p3 = por %p579_p2, %p578_p1 }
  0x22   :  { %526 = vmatpush3.bf16.msra.mxu0 %v525_v30  ;;  %p581_p4 = pnand %p580_p3, %p574_p0 }
  0x23   :  { %558 = vmatpush3.bf16.msra.mxu1 %v557_v34  ;;  %528 = vmatprep.subr.bf16.mxu0 %v527_v38 }
  0x24   :  { %560 = vmatprep.subr.bf16.mxu1 %v559_v39 }
  0x26   :  { %530 = vmatpush3.bf16.msra.mxu0 %v529_v43 }
  0x27   :  { %562 = vmatpush3.bf16.msra.mxu1 %v561_v45 }
  0xdc   :  { %v119_v57 = vpop.f32.mrb[0].mxu0 }
  0xdd   :  { %v120_v58 = vadd.f32 %v119_v57, %v32_v53  ;;  %v190_v59 = vpop.f32.mrb[0].mxu1  ;;  %v121_v60 = vpop.f32.mrb[1].mxu0 }
  0xde   :  { %v122_v61 = vadd.f32 %v121_v60, %v36_v54  ;;  %v192_v62 = vpop.f32.mrb[1].mxu1  ;;  %v191_v63 = vadd.f32 %v190_v59, %v40_v55 }
  0xdf   :  { %v193_v0 = vadd.f32 %v192_v62, %v44_v56  ;;  %565 = vtanh.f32 %v120_v58 }
  0xe0   :  { %567 = vtanh.f32 %v122_v61 }
  0xe1   :  { %569 = vtanh.f32 %v193_v0 }
  0xe2   :  { %571 = vtanh.f32 %v191_v63 }
  0xe9   :  { %v566_v1 = vpop.eup %565 }
  0xea   :  { %v568_v2 = vpop.eup %567 }
  0xeb   :  { %v570_v3 = vpop.eup %569  ;;  %327 = vmatprep.mubr.f32.mxu0 %v568_v2 }
  0xec   :  { %v572_v4 = vpop.eup %571  ;;  %397 = vmatprep.mubr.f32.mxu1 %v570_v3  ;;  %328 = vmatmul.mubr.f32.vlgmr.msra.gmra.mrb[2].mxu0 %v566_v1 }
  0xed   :  { %398 = vmatmul.mubr.f32.vlgmr.msra.gmra.mrb[2].mxu1 %v572_v4 }
 0x1bf   :  { %v453_v5 = vpop.f32.mrb[2].mxu0 }
 0x1c0   :  { %v488_v6 = vpop.f32.mrb[2].mxu1  ;;  %v454_v7 = vpop.f32.mrb[3].mxu0 }
 0x1c1   :  { %v455_v8 = vadd.f32 %v454_v7, %v453_v5  ;;  %v489_v9 = vpop.f32.mrb[3].mxu1 }
 0x1c2   :  { %v490_v10 = vadd.f32 %v489_v9, %v488_v6 }
 0x1c4   :  { %v400_v11 = vadd.f32 %v490_v10, %v455_v8 }
 0x1c6   :  { %404 = vst.msk [vmem:[#allocation2] sm:$0xff] %vm403_vm1, %v400_v11 }
 0x1c7   :  { %584 = shalt.err (!%p581_p4)
}
 0x1c8   :  { %s585_s26 = scalar_lea.hbm %s864_s4, 128 }
 0x1c9   :  { %p586_p5 = scmp.ne.s32.totalorder %s864_s4, %s585_s26  ;;  %p589_p6 = scmp.lt.u32.totalorder %s585_s26, %s864_s4 }
 0x1cb   :  { %p591_p7 = pnand %p589_p6, %p586_p5 }
 0x1cd   :  { %594 = shalt.err (!%p591_p7)
}
 0x1ce   :  { %414 = dma.vmem_to_hbm [thread:$0]  %s412_s3, 128, %s864_s4, [#allocation3]  }
 0x1cf   :  { %595 = dma.done.wait [#allocation3], 128  }
 0x1d0   :  { %596 = vsyncadd [#allocation3], 4294967168 }
 0x1d1   :  { %418 = vsyncpa [#allocation3], 1 }

// kernel: tpu_custom_call.1
= control target key start
LH: loop header
LB: loop body
LE: loop exit
PB: predicated region body
PF: predicated region fallthrough
CT: control target
= control target key end

     0   :  { %v597_v7 = vmov 0.0   ;;  %vm49_vm0 = vcmask 130048   ;;  %s860_s0 = inlined_call_operand.vmem [shape: f32[8,16], index: 0, kind: input, shape index: {}]   ;;  %s861_s1 = inlined_call_operand.vmem [shape: f32[16,512], index: 1, kind: input, shape index: {}]   ;;  %s862_s2 = inlined_call_operand.vmem [shape: f32[1,512], index: 2, kind: input, shape index: {}]   ;;  %s863_s3 = inlined_call_operand.vmem [shape: f32[1,512,32], index: 3, kind: input, shape index: {}]   ;;  %s864_s4 = inlined_call_operand.hbm [shape: f32[8,32], index: 4, kind: output, shape index: {}]  }
   0x1   :  { %v20_v0 = vld [vmem:[%s861_s1 + $0x8] sm:$0xff]  ;;  %v22_v2 = vld [vmem:[%s861_s1 + $0x18] sm:$0xff]  ;;  %v19_v5 = vld [vmem:[%s861_s1] sm:$0xff]  ;;  %117 = vmatprep.mubr.f32.mxu0 %v597_v7  ;;  %188 = vmatprep.mubr.f32.mxu1 %v597_v7 }
   0x2   :  { %v24_v1 = vld [vmem:[%s861_s1 + $0x28] sm:$0xff]  ;;  %v26_v4 = vld [vmem:[%s861_s1 + $0x38] sm:$0xff]  ;;  %v23_v6 = vld [vmem:[%s861_s1 + $0x20] sm:$0xff] }
   0x3   :  { %v491_v3 = vpack.c.bf16 %v24_v1, %v20_v0  ;;  %v495_v8 = vpack.c.bf16 %v26_v4, %v22_v2  ;;  %v493_v9 = vpack.c.bf16 %v23_v6, %v19_v5  ;;  %v21_v10 = vld [vmem:[%s861_s1 + $0x10] sm:$0xff]  ;;  %v18_v12 = vld [vmem:[%s860_s0] sm:$0xff]  ;;  %v216_v15 = vld [vmem:[%s863_s3 + $0x88] sm:$0xff] }
   0x4   :  { %v25_v11 = vld [vmem:[%s861_s1 + $0x30] sm:$0xff]  ;;  %v215_v14 = vld [vmem:[%s863_s3 + $0x80] sm:$0xff]  ;;  %v248_v18 = vld [vmem:[%s863_s3 + $0x188] sm:$0xff] }
   0x5   :  { %492 = vmatprep.subr.bf16.mxu0 %v491_v3  ;;  %v497_v13 = vpack.c.bf16 %v25_v11, %v21_v10  ;;  %v247_v16 = vld [vmem:[%s863_s3 + $0x180] sm:$0xff]  ;;  %496 = vmatprep.subr.bf16.mxu1 %v495_v8  ;;  %v499_v17 = vpack.c.bf16 %v216_v15, %v215_v14  ;;  %v200_v20 = vld [vmem:[%s863_s3 + $0x8] sm:$0xff]  ;;  %v217_v25 = vld [vmem:[%s863_s3 + $0x90] sm:$0xff] }
   0x6   :  { %494 = vmatpush1.bf16.msra.mxu0 %v493_v9  ;;  %v199_v19 = vld [vmem:[%s863_s3] sm:$0xff]  ;;  %v531_v21 = vpack.c.bf16 %v248_v18, %v247_v16  ;;  %v232_v24 = vld [vmem:[%s863_s3 + $0x108] sm:$0xff]  ;;  %v218_v27 = vld [vmem:[%s863_s3 + $0x98] sm:$0xff] }
   0x7   :  { %498 = vmatpush1.bf16.msra.mxu1 %v497_v13  ;;  %v501_v22 = vpack.c.bf16 %v200_v20, %v199_v19  ;;  %v231_v23 = vld [vmem:[%s863_s3 + $0x100] sm:$0xff]  ;;  %500 = vmatprep.subr.bf16.mxu0 %v499_v17  ;;  %v249_v28 = vld [vmem:[%s863_s3 + $0x190] sm:$0xff]  ;;  %v250_v29 = vld [vmem:[%s863_s3 + $0x198] sm:$0xff]  ;;  %v503_v30 = vpack.c.bf16 %v218_v27, %v217_v25 }
   0x8   :  { %v533_v26 = vpack.c.bf16 %v232_v24, %v231_v23  ;;  %532 = vmatprep.subr.bf16.mxu1 %v531_v21  ;;  %v535_v31 = vpack.c.bf16 %v250_v29, %v249_v28  ;;  %v201_v32 = vld [vmem:[%s863_s3 + $0x10] sm:$0xff]  ;;  %v202_v33 = vld [vmem:[%s863_s3 + $0x18] sm:$0xff]  ;;  %v219_v37 = vld [vmem:[%s863_s3 + $0xa0] sm:$0xff] }
   0x9   :  { %419 = vmatmul.mubr.msk.f32.vlgmr.msra.gmra.mrb[0].mxu0 %vm49_vm0, %v18_v12  ;;  %v233_v34 = vld [vmem:[%s863_s3 + $0x110] sm:$0xff]  ;;  %v505_v35 = vpack.c.bf16 %v202_v33, %v201_v32  ;;  %v234_v36 = vld [vmem:[%s863_s3 + $0x118] sm:$0xff]  ;;  %v220_v38 = vld [vmem:[%s863_s3 + $0xa8] sm:$0xff] }
   0xa   :  { %420 = vmatmul.mubr.msk.f32.vlgmr.msra.gmra.mrb[0].mxu1 %vm49_vm0, %v18_v12  ;;  %502 = vmatpush3.bf16.msra.mxu0 %v501_v22  ;;  %v537_v39 = vpack.c.bf16 %v234_v36, %v233_v34  ;;  %v507_v40 = vpack.c.bf16 %v220_v38, %v219_v37  ;;  %v251_v41 = vld [vmem:[%s863_s3 + $0x1a0] sm:$0xff]  ;;  %v252_v42 = vld [vmem:[%s863_s3 + $0x1a8] sm:$0xff]  ;;  %v221_v48 = vld [vmem:[%s863_s3 + $0xb0] sm:$0xff] }
   0xb   :  { %534 = vmatpush3.bf16.msra.mxu1 %v533_v26  ;;  %504 = vmatprep.subr.bf16.mxu0 %v503_v30  ;;  %v203_v43 = vld [vmem:[%s863_s3 + $0x20] sm:$0xff]  ;;  %v539_v44 = vpack.c.bf16 %v252_v42, %v251_v41  ;;  %v204_v45 = vld [vmem:[%s863_s3 + $0x28] sm:$0xff]  ;;  %v222_v49 = vld [vmem:[%s863_s3 + $0xb8] sm:$0xff] }
   0xc   :  { %536 = vmatprep.subr.bf16.mxu1 %v535_v31  ;;  %v235_v46 = vld [vmem:[%s863_s3 + $0x120] sm:$0xff]  ;;  %v236_v47 = vld [vmem:[%s863_s3 + $0x128] sm:$0xff]  ;;  %v253_v50 = vld [vmem:[%s863_s3 + $0x1b0] sm:$0xff]  ;;  %v509_v51 = vpack.c.bf16 %v204_v45, %v203_v43  ;;  %v511_v54 = vpack.c.bf16 %v222_v49, %v221_v48 }
   0xd   :  { %v254_v52 = vld [vmem:[%s863_s3 + $0x1b8] sm:$0xff]  ;;  %v541_v53 = vpack.c.bf16 %v236_v47, %v235_v46  ;;  %v205_v55 = vld [vmem:[%s863_s3 + $0x30] sm:$0xff] }
   0xe   :  { %506 = vmatpush3.bf16.msra.mxu0 %v505_v35  ;;  %v206_v56 = vld [vmem:[%s863_s3 + $0x38] sm:$0xff]  ;;  %v543_v57 = vpack.c.bf16 %v254_v52, %v253_v50  ;;  %v237_v58 = vld [vmem:[%s863_s3 + $0x130] sm:$0xff] }
   0xf   :  { %538 = vmatpush3.bf16.msra.mxu1 %v537_v39  ;;  %508 = vmatprep.subr.bf16.mxu0 %v507_v40  ;;  %v238_v59 = vld [vmem:[%s863_s3 + $0x138] sm:$0xff] }
  0x10   :  { %540 = vmatprep.subr.bf16.mxu1 %v539_v44 }
  0x11   :  { %9 = vsyncpa [#allocation3], 0  ;;  %v513_v60 = vpack.c.bf16 %v206_v56, %v205_v55  ;;  %v545_v61 = vpack.c.bf16 %v238_v59, %v237_v58  ;;  %v223_v62 = vld [vmem:[%s863_s3 + $0xc0] sm:$0xff]  ;;  %v224_v63 = vld [vmem:[%s863_s3 + $0xc8] sm:$0xff]  ;;  %v29_v46 = vlaneseq  ;;  %vm403_vm1 = vcmask 261120  }
  0x12   :  { %510 = vmatpush3.bf16.msra.mxu0 %v509_v51  ;;  %v255_v0 = vld [vmem:[%s863_s3 + $0x1c0] sm:$0xff]  ;;  %v515_v1 = vpack.c.bf16 %v224_v63, %v223_v62  ;;  %v256_v2 = vld [vmem:[%s863_s3 + $0x1c8] sm:$0xff]  ;;  %v225_v10 = vld [vmem:[%s863_s3 + $0xd0] sm:$0xff] }
  0x13   :  { %542 = vmatpush3.bf16.msra.mxu1 %v541_v53  ;;  %512 = vmatprep.subr.bf16.mxu0 %v511_v54  ;;  %v547_v3 = vpack.c.bf16 %v256_v2, %v255_v0  ;;  %v207_v4 = vld [vmem:[%s863_s3 + $0x40] sm:$0xff]  ;;  %v208_v5 = vld [vmem:[%s863_s3 + $0x48] sm:$0xff]  ;;  %v226_v11 = vld [vmem:[%s863_s3 + $0xd8] sm:$0xff]  ;;  %v30_v47 = vshrl.u32 %v29_v46, 7 }
  0x14   :  { %544 = vmatprep.subr.bf16.mxu1 %v543_v57  ;;  %v239_v6 = vld [vmem:[%s863_s3 + $0x140] sm:$0xff]  ;;  %v517_v7 = vpack.c.bf16 %v208_v5, %v207_v4  ;;  %v240_v8 = vld [vmem:[%s863_s3 + $0x148] sm:$0xff]  ;;  %v257_v12 = vld [vmem:[%s863_s3 + $0x1d0] sm:$0xff]  ;;  %v519_v13 = vpack.c.bf16 %v226_v11, %v225_v10 }
  0x15   :  { %v549_v9 = vpack.c.bf16 %v240_v8, %v239_v6  ;;  %v258_v14 = vld [vmem:[%s863_s3 + $0x1d8] sm:$0xff]  ;;  %v209_v15 = vld [vmem:[%s863_s3 + $0x50] sm:$0xff]  ;;  %v227_v22 = vld [vmem:[%s863_s3 + $0xe0] sm:$0xff]  ;;  %v31_v48 = vsub.s32 0, %v30_v47  ;;  %v35_v50 = vsub.s32 1, %v30_v47  ;;  %v39_v51 = vsub.s32 2, %v30_v47 }
  0x16   :  { %514 = vmatpush3.bf16.msra.mxu0 %v513_v60  ;;  %v210_v16 = vld [vmem:[%s863_s3 + $0x58] sm:$0xff]  ;;  %v551_v17 = vpack.c.bf16 %v258_v14, %v257_v12  ;;  %v241_v19 = vld [vmem:[%s863_s3 + $0x150] sm:$0xff]  ;;  %v228_v23 = vld [vmem:[%s863_s3 + $0xe8] sm:$0xff]  ;;  %v43_v52 = vsub.s32 3, %v30_v47 }
  0x17   :  { %546 = vmatpush3.bf16.msra.mxu1 %v545_v61  ;;  %516 = vmatprep.subr.bf16.mxu0 %v515_v1  ;;  %v521_v18 = vpack.c.bf16 %v210_v16, %v209_v15  ;;  %v242_v20 = vld [vmem:[%s863_s3 + $0x158] sm:$0xff]  ;;  %v259_v24 = vld [vmem:[%s863_s3 + $0x1e0] sm:$0xff]  ;;  %v523_v25 = vpack.c.bf16 %v228_v23, %v227_v22  ;;  %v260_v26 = vld [vmem:[%s863_s3 + $0x1e8] sm:$0xff] }
  0x18   :  { %548 = vmatprep.subr.bf16.mxu1 %v547_v3  ;;  %v553_v21 = vpack.c.bf16 %v242_v20, %v241_v19  ;;  %v211_v27 = vld [vmem:[%s863_s3 + $0x60] sm:$0xff]  ;;  %v212_v28 = vld [vmem:[%s863_s3 + $0x68] sm:$0xff]  ;;  %v555_v29 = vpack.c.bf16 %v260_v26, %v259_v24  ;;  %v229_v33 = vld [vmem:[%s863_s3 + $0xf0] sm:$0xff] }
  0x19   :  { %v525_v30 = vpack.c.bf16 %v212_v28, %v211_v27  ;;  %v243_v31 = vld [vmem:[%s863_s3 + $0x160] sm:$0xff]  ;;  %v244_v32 = vld [vmem:[%s863_s3 + $0x168] sm:$0xff]  ;;  %v230_v35 = vld [vmem:[%s863_s3 + $0xf8] sm:$0xff] }
  0x1a   :  { %518 = vmatpush3.bf16.msra.mxu0 %v517_v7  ;;  %v557_v34 = vpack.c.bf16 %v244_v32, %v243_v31  ;;  %v261_v36 = vld [vmem:[%s863_s3 + $0x1f0] sm:$0xff]  ;;  %v262_v37 = vld [vmem:[%s863_s3 + $0x1f8] sm:$0xff]  ;;  %v527_v38 = vpack.c.bf16 %v230_v35, %v229_v33  ;;  %v27_v49 = vld [vmem:[%s862_s2] sm:$0xf]  ;;  %s598_s2 = smov [#allocation2]  }
  0x1b   :  { %550 = vmatpush3.bf16.msra.mxu1 %v549_v9  ;;  %520 = vmatprep.subr.bf16.mxu0 %v519_v13  ;;  %v559_v39 = vpack.c.bf16 %v262_v37, %v261_v36  ;;  %v213_v40 = vld [vmem:[%s863_s3 + $0x70] sm:$0xff]  ;;  %v214_v41 = vld [vmem:[%s863_s3 + $0x78] sm:$0xff]  ;;  %v32_v53 = vrot.slane %v27_v49, %v31_v48  ;;  %v36_v54 = vrot.slane %v27_v49, %v35_v50 }
  0x1c   :  { %552 = vmatprep.subr.bf16.mxu1 %v551_v17  ;;  %v245_v42 = vld [vmem:[%s863_s3 + $0x170] sm:$0xff]  ;;  %v529_v43 = vpack.c.bf16 %v214_v41, %v213_v40  ;;  %v246_v44 = vld [vmem:[%s863_s3 + $0x178] sm:$0xff]  ;;  %v40_v55 = vrot.slane %v27_v49, %v39_v51  ;;  %v44_v56 = vrot.slane %v27_v49, %v43_v52  ;;  %s411_s3 = sshll.u32 %s598_s2, 4  ;;  %s412_s3 = int_to_ptr.vmem [resolvable:$true] %s411_s3 }
  0x1d   :  { %v561_v45 = vpack.c.bf16 %v246_v44, %v245_v42  ;;  %s573_s23 = scalar_lea.vmem %s412_s3, 128  ;;  %p578_p1 = scmp.lt.s32.totalorder %s412_s3, %s412_s3 }
  0x1e   :  { %522 = vmatpush3.bf16.msra.mxu0 %v521_v18  ;;  %p574_p0 = scmp.ne.s32.totalorder %s412_s3, %s573_s23  ;;  %p579_p2 = scmp.lt.s32.totalorder %s573_s23, %s573_s23 }
  0x1f   :  { %554 = vmatpush3.bf16.msra.mxu1 %v553_v21  ;;  %524 = vmatprep.subr.bf16.mxu0 %v523_v25 }
  0x20   :  { %556 = vmatprep.subr.bf16.mxu1 %v555_v29  ;;  %p580_p3 = por %p579_p2, %p578_p1 }
  0x22   :  { %526 = vmatpush3.bf16.msra.mxu0 %v525_v30  ;;  %p581_p4 = pnand %p580_p3, %p574_p0 }
  0x23   :  { %558 = vmatpush3.bf16.msra.mxu1 %v557_v34  ;;  %528 = vmatprep.subr.bf16.mxu0 %v527_v38 }
  0x24   :  { %560 = vmatprep.subr.bf16.mxu1 %v559_v39 }
  0x26   :  { %530 = vmatpush3.bf16.msra.mxu0 %v529_v43 }
  0x27   :  { %562 = vmatpush3.bf16.msra.mxu1 %v561_v45 }
  0xdc   :  { %v119_v57 = vpop.f32.mrb[0].mxu0 }
  0xdd   :  { %v120_v58 = vadd.f32 %v119_v57, %v32_v53  ;;  %v190_v59 = vpop.f32.mrb[0].mxu1  ;;  %v121_v60 = vpop.f32.mrb[1].mxu0 }
  0xde   :  { %v122_v61 = vadd.f32 %v121_v60, %v36_v54  ;;  %v192_v62 = vpop.f32.mrb[1].mxu1  ;;  %v191_v63 = vadd.f32 %v190_v59, %v40_v55 }
  0xdf   :  { %v193_v0 = vadd.f32 %v192_v62, %v44_v56  ;;  %565 = vtanh.f32 %v120_v58 }
  0xe0   :  { %567 = vtanh.f32 %v122_v61 }
  0xe1   :  { %569 = vtanh.f32 %v193_v0 }
  0xe2   :  { %571 = vtanh.f32 %v191_v63 }
  0xe9   :  { %v566_v1 = vpop.eup %565 }
  0xea   :  { %v568_v2 = vpop.eup %567 }
  0xeb   :  { %v570_v3 = vpop.eup %569  ;;  %327 = vmatprep.mubr.f32.mxu0 %v568_v2 }
  0xec   :  { %v572_v4 = vpop.eup %571  ;;  %397 = vmatprep.mubr.f32.mxu1 %v570_v3  ;;  %328 = vmatmul.mubr.f32.vlgmr.msra.gmra.mrb[2].mxu0 %v566_v1 }
  0xed   :  { %398 = vmatmul.mubr.f32.vlgmr.msra.gmra.mrb[2].mxu1 %v572_v4 }
 0x1bf   :  { %v453_v5 = vpop.f32.mrb[2].mxu0 }
 0x1c0   :  { %v488_v6 = vpop.f32.mrb[2].mxu1  ;;  %v454_v7 = vpop.f32.mrb[3].mxu0 }
 0x1c1   :  { %v455_v8 = vadd.f32 %v454_v7, %v453_v5  ;;  %v489_v9 = vpop.f32.mrb[3].mxu1 }
 0x1c2   :  { %v490_v10 = vadd.f32 %v489_v9, %v488_v6 }
 0x1c4   :  { %v400_v11 = vadd.f32 %v490_v10, %v455_v8 }
 0x1c6   :  { %404 = vst.msk [vmem:[#allocation2] sm:$0xff] %vm403_vm1, %v400_v11 }
 0x1c7   :  { %584 = shalt.err (!%p581_p4)
}
 0x1c8   :  { %s585_s26 = scalar_lea.hbm %s864_s4, 128 }
 0x1c9   :  { %p586_p5 = scmp.ne.s32.totalorder %s864_s4, %s585_s26  ;;  %p589_p6 = scmp.lt.u32.totalorder %s585_s26, %s864_s4 }
 0x1cb   :  { %p591_p7 = pnand %p589_p6, %p586_p5 }
 0x1cd   :  { %594 = shalt.err (!%p591_p7)
}
 0x1ce   :  { %414 = dma.vmem_to_hbm [thread:$0]  %s412_s3, 128, %s864_s4, [#allocation3]  }
 0x1cf   :  { %595 = dma.done.wait [#allocation3], 128  }
 0x1d0   :  { %596 = vsyncadd [#allocation3], 4294967168 }
 0x1d1   :  { %418 = vsyncpa [#allocation3], 1 }

</bundles_post_ra>
